<compile_context>
chip_gen: v5e
topology: v5e:2x2
jax: 0.10.0
libtpu: 0.0.40
codegen_flags: <defaults>
</compile_context>

<pallas_src>
import math

import jax
import jax.numpy as jnp
from jax.experimental import pallas as pl
from jax.experimental.pallas import tpu as pltpu

L2_REG = 0.05  # weight_decay of Regularization(order=2, weight_decay=0.05)


def _round_up(x: int, m: int) -> int:
    return ((x + m - 1) // m) * m


def _vmem_limit_bytes() -> int:
    """Per-generation VMEM limit: capacity * 3/4, clamped to [32 MiB, 100 MiB]."""
    cap = 64 * 1024 * 1024
    try:
        cap = int(getattr(pltpu.get_tpu_info(), "vmem_capacity_bytes", cap))
    except Exception:
        pass
    return max(32 * 1024 * 1024, min(100 * 1024 * 1024, (cap * 3) // 4))


# ----------------------------------------------------------------------------
# Tiled NLL kernel. Grid = (column tiles, row/contraction tiles).
#   mask[i, j] = 1 where y[j] <= y[i]           (== "mask[y.T - y > 0] = 0")
#   num[j]     = sum_i exp(risk[i] - m) * mask[i, j]   (MXU, lhs row 0)
#   den[j]     = sum_i valid(i)        * mask[i, j]    (MXU, lhs row 1)
#   partial    = sum_j (log(num[j]) - log(den[j])) * e[j]   (this column tile)
# ----------------------------------------------------------------------------
def _nll_tile_kernel(lhs_ref, ycol_ref, ye_ref, out_ref, acc_ref):
    k = pl.program_id(1)

    @pl.when(k == 0)
    def _():
        acc_ref[...] = jnp.zeros_like(acc_ref)

    y_col = ycol_ref[...]                              # (tile_k, 1)      f32
    y_row = ye_ref[0:1, :]                             # (1, tile_n)      f32
    mask = (y_row <= y_col).astype(jnp.bfloat16)       # (tile_k, tile_n) bf16

    # Both axis-0 reductions with one bf16 MXU matmul, f32 accumulation.
    acc_ref[...] += jnp.dot(lhs_ref[...], mask,
                            preferred_element_type=jnp.float32)   # (8, tile_n)

    @pl.when(k == pl.num_programs(1) - 1)
    def _():
        e_row = ye_ref[1:2, :]                         # (1, tile_n), 0 in padding
        num = acc_ref[0:1, :]
        den = acc_ref[1:2, :]
        partial = jnp.sum((jnp.log(num) - jnp.log(den)) * e_row)
        # Lane-dense (8, 128) unmasked store; host side picks element [0, 0].
        out_ref[...] = jnp.full((8, 128), partial, dtype=jnp.float32)


def negative_log_likelihood(risk_pred, y, e, weight_list, *, tile_n=512, tile_k=1024):
    """risk_pred, y, e: arrays of shape (N, 1) (or (N,)).
    weight_list: list of the network's 'weight' parameter matrices (L2-regularized).
    tile_n: column tile width (multiple of 128); tile_k: row/contraction tile.
    Live VMEM per step ~ tile_k * tile_n * 2 bytes (bf16 mask), independent of N.
    """
    risk = risk_pred.astype(jnp.float32).reshape(-1)   # (N,)
    yv = y.astype(jnp.float32).reshape(-1)
    ev = e.astype(jnp.float32).reshape(-1)
    n = risk.shape[0]

    n128 = _round_up(n, 128)
    tile_n = _round_up(min(tile_n, n128), 128)
    # v7x megacore: the column axis is "parallel" and shards across 2 TCs, so
    # prefer >= 2 column tiles whenever N allows it.
    while tile_n > 128 and _round_up(n, tile_n) // tile_n < 2:
        tile_n = max(128, (tile_n // 2) // 128 * 128)
    tile_k = _round_up(min(tile_k, n128), 128)

    n_pad = _round_up(n, math.lcm(tile_n, tile_k))
    num_n_tiles = n_pad // tile_n
    num_k_tiles = n_pad // tile_k

    # Live bf16 mask tile must stay far under VMEM regardless of N.
    assert tile_k * tile_n * 2 <= 8 * 1024 * 1024, "tile_k x tile_n too large"

    # --- O(N) glue: padded, lane-major operands --------------------------------
    # Exact log-sum-exp stabilization: exp(risk - m) in-kernel; the shift cancels
    # in log(num/den) and is restored below as m * num_occurs.
    m = jnp.max(risk)
    lhs = jnp.zeros((8, n_pad), jnp.bfloat16)
    lhs = lhs.at[0, :n].set(jnp.exp(risk - m).astype(jnp.bfloat16))  # numerator wts
    lhs = lhs.at[1, :n].set(jnp.bfloat16(1.0))                       # valid-row ind.

    # Column padding uses min(y): padded columns get den = N > 0 (finite log) and
    # contribute nothing (their e is 0).  Padded rows are neutralized by the zero
    # columns of `lhs` (they never reach num/den).
    y_min = jnp.min(yv)
    y_col = jnp.full((n_pad, 1), y_min, jnp.float32).at[:n, 0].set(yv)
    ye = jnp.zeros((2, n_pad), jnp.float32)
    ye = ye.at[0, :].set(y_min).at[0, :n].set(yv)                    # row 0: y
    ye = ye.at[1, :n].set(ev)                                        # row 1: e

    out = pl.pallas_call(
        _nll_tile_kernel,
        out_shape=jax.ShapeDtypeStruct((8, 128 * num_n_tiles), jnp.float32),
        grid_spec=pltpu.PrefetchScalarGridSpec(
            num_scalar_prefetch=0,
            grid=(num_n_tiles, num_k_tiles),                 # reduction axis last
            in_specs=[
                pl.BlockSpec((8, tile_k), lambda j, k: (0, k)),   # lhs row tile (bf16)
                pl.BlockSpec((tile_k, 1), lambda j, k: (k, 0)),   # y column tile
                pl.BlockSpec((2, tile_n), lambda j, k: (0, j)),   # [y_row; e_row] tile
            ],
            out_specs=pl.BlockSpec((8, 128), lambda j, k: (0, j)),   # per-j partial
            scratch_shapes=[pltpu.VMEM((8, tile_n), jnp.float32)],   # num/den acc
        ),
        compiler_params=pltpu.CompilerParams(
            dimension_semantics=("parallel", "arbitrary"),
            vmem_limit_bytes=_vmem_limit_bytes(),
        ),
    )(lhs, y_col, ye)

    partials = out[0, ::128]                                  # (num_n_tiles,)

    # --- final scalar glue (matches the PyTorch forward) -----------------------
    num_occurs = jnp.sum(ev)
    sum_loss1_e = jnp.sum(partials) + m * num_occurs          # sum_j loss1[j]*e[j]
    sum_risk_e = jnp.sum(risk * ev)                           # sum_j risk[j]*e[j]
    safe_n = jnp.where(num_occurs == 0.0, 1.0, num_occurs)
    neg_log_loss = -(sum_risk_e - sum_loss1_e) / safe_n

    # L2 regularization over 'weight' params: plain jnp (tiny reductions).
    reg = jnp.float32(0.0)
    for w in weight_list:
        wf = w.astype(jnp.float32)
        reg = reg + jnp.sqrt(jnp.sum(wf * wf))
    reg = jnp.float32(L2_REG) * reg

    # num_occurs == 0 branch returns 1e-7 without reg, matching the reference.
    return jnp.where(num_occurs == 0.0, jnp.float32(1e-07), neg_log_loss + reg)


# ----------------------------------------------------------------------------
# Pure-JAX reference (mirrors the PyTorch forward) for a sanity check.
# ----------------------------------------------------------------------------
def _reference(risk_pred, y, e, weight_list):
    mask = jnp.where((y.T - y) > 0, 0.0, 1.0)
    loss1 = jnp.sum(jnp.exp(risk_pred) * mask, axis=0) / jnp.sum(mask, axis=0)
    loss1 = jnp.log(loss1).reshape(-1, 1)
    num_occurs = jnp.sum(e)
    neg_log = -jnp.sum((risk_pred - loss1) * e) / jnp.where(num_occurs == 0, 1.0, num_occurs)
    reg = L2_REG * sum(jnp.sqrt(jnp.sum(w * w)) for w in weight_list)
    return jnp.where(num_occurs == 0.0, 1e-07, neg_log + reg)


if __name__ == "__main__":
    key = jax.random.PRNGKey(0)
    k1, k2, k3, k4, k5, k6, k7, k8 = jax.random.split(key, 8)

    # survival inputs consistent with the module: (N, 1) column vectors
    N = 8
    HIDDEN = 32
    IN_DIM = 16
    risk_pred = jax.random.normal(k1, (N, 1), dtype=jnp.float32)
    y = jax.random.randint(k2, (N, 1), minval=1, maxval=20).astype(jnp.float32)
    e = (jax.random.uniform(k3, (N, 1)) > 0.4).astype(jnp.float32)

    # synthetic network 'weight' parameters (regularized only)
    w1 = jax.random.normal(k4, (HIDDEN, IN_DIM), dtype=jnp.float32) * 0.1
    w2 = jax.random.normal(k5, (1, HIDDEN), dtype=jnp.float32) * 0.1
    weights = [w1, w2]

    loss = jax.block_until_ready(negative_log_likelihood(risk_pred, y, e, weights))
    ref = _reference(risk_pred, y, e, weights)
    # Tolerance accommodates bf16 mask/exp inputs + MXU accumulation-order effects.
    assert jnp.allclose(loss, ref, rtol=5e-3, atol=5e-3), (loss, ref)

    # second check: non-multiple-of-tile N exercises padding + a 2-D (j, k) grid
    N2 = 300
    risk2 = jax.random.normal(k6, (N2, 1), dtype=jnp.float32)
    y2 = jax.random.randint(k7, (N2, 1), minval=1, maxval=50).astype(jnp.float32)
    e2 = (jax.random.uniform(k8, (N2, 1)) > 0.5).astype(jnp.float32)
    loss2 = jax.block_until_ready(
        negative_log_likelihood(risk2, y2, e2, weights, tile_n=128, tile_k=256))
    ref2 = _reference(risk2, y2, e2, weights)
    assert jnp.allclose(loss2, ref2, rtol=5e-3, atol=5e-3), (loss2, ref2)

    print("KERNEL_OK")
</pallas_src>

<mosaic_0001>
module attributes {stable_mosaic.version = 11 : i64} {
  func.func @_nll_tile_kernel(%arg0: i32, %arg1: i32, %arg2: memref<8x128xbf16, #tpu.memory_space<vmem>>, %arg3: memref<128x1xf32, #tpu.memory_space<vmem>>, %arg4: memref<2x128xf32, #tpu.memory_space<vmem>>, %arg5: memref<8x128xf32, #tpu.memory_space<vmem>>, %arg6: memref<8x128xf32, #tpu.memory_space<vmem>>) attributes {dimension_semantics = [#tpu.dimension_semantics<parallel>, #tpu.dimension_semantics<arbitrary>], iteration_bounds = array<i64: 1, 1>, scalar_prefetch = 0 : i64, scratch_operands = 1 : i64, tpu.core_type = #tpu.core_type<tc>, window_params = [{transform_indices = @transform_0, window_bounds = array<i64: 8, 128>}, {transform_indices = @transform_1, window_bounds = array<i64: 128, 1>}, {transform_indices = @transform_2, window_bounds = array<i64: 2, 128>}, {transform_indices = @transform_3, window_bounds = array<i64: 8, 128>}]} {
    %c0_i32 = arith.constant 0 : i32
    %0 = arith.cmpi eq, %arg1, %c0_i32 : i32
    %1 = arith.extui %0 : i1 to i32
    %c0_i32_0 = arith.constant 0 : i32
    %2 = arith.cmpi ne, %1, %c0_i32_0 : i32
    scf.if %2 {
      %cst_12 = arith.constant 0.000000e+00 : f32
      %19 = vector.broadcast %cst_12 : f32 to vector<8x128xf32>
      %c0_13 = arith.constant 0 : index
      %c0_14 = arith.constant 0 : index
      %20 = vector.load %arg6[%c0_13, %c0_14] : memref<8x128xf32, #tpu.memory_space<vmem>>, vector<8x128xf32>
      tpu.vector_store %arg6[%c0_13, %c0_14], %19 {strides = array<i32>} : memref<8x128xf32, #tpu.memory_space<vmem>>, vector<8x128xf32>,
    } else {
    }
    %c0 = arith.constant 0 : index
    %c0_1 = arith.constant 0 : index
    %3 = vector.load %arg3[%c0, %c0_1] : memref<128x1xf32, #tpu.memory_space<vmem>>, vector<128x1xf32>
    %c0_2 = arith.constant 0 : index
    %c0_3 = arith.constant 0 : index
    %4 = vector.load %arg4[%c0_2, %c0_3] : memref<2x128xf32, #tpu.memory_space<vmem>>, vector<1x128xf32>
    %5 = vector.broadcast %4 : vector<1x128xf32> to vector<128x128xf32>
    %6 = vector.broadcast %3 : vector<128x1xf32> to vector<128x128xf32>
    %7 = arith.cmpf ole, %5, %6 : vector<128x128xf32>
    %8 = arith.extui %7 : vector<128x128xi1> to vector<128x128xi32>
    %9 = arith.sitofp %8 : vector<128x128xi32> to vector<128x128xf32>
    %10 = arith.truncf %9 : vector<128x128xf32> to vector<128x128xbf16>
    %c0_4 = arith.constant 0 : index
    %c0_5 = arith.constant 0 : index
    %11 = vector.load %arg6[%c0_4, %c0_5] : memref<8x128xf32, #tpu.memory_space<vmem>>, vector<8x128xf32>
    %c0_6 = arith.constant 0 : index
    %c0_7 = arith.constant 0 : index
    %12 = vector.load %arg2[%c0_6, %c0_7] : memref<8x128xbf16, #tpu.memory_space<vmem>>, vector<8x128xbf16>
    %cst = arith.constant dense<0.000000e+00> : vector<8x128xf32>
    %13 = tpu.matmul %12, %10, %cst {dimension_numbers = #tpu.dot_dimension_numbers<[1], [0], [0], [1], [0, 0, 1, 1], [], []>} : vector<8x128xbf16>, vector<128x128xbf16>, vector<8x128xf32> -> vector<8x128xf32>
    %14 = arith.addf %11, %13 : vector<8x128xf32>
    %c0_8 = arith.constant 0 : index
    %c0_9 = arith.constant 0 : index
    %15 = vector.load %arg6[%c0_8, %c0_9] : memref<8x128xf32, #tpu.memory_space<vmem>>, vector<8x128xf32>
    tpu.vector_store %arg6[%c0_8, %c0_9], %14 {strides = array<i32>} : memref<8x128xf32, #tpu.memory_space<vmem>>, vector<8x128xf32>,
    %c0_i32_10 = arith.constant 0 : i32
    %16 = arith.cmpi eq, %arg1, %c0_i32_10 : i32
    %17 = arith.extui %16 : i1 to i32
    %c0_i32_11 = arith.constant 0 : i32
    %18 = arith.cmpi ne, %17, %c0_i32_11 : i32
    scf.if %18 {
      %c1 = arith.constant 1 : index
      %c0_12 = arith.constant 0 : index
      %19 = vector.load %arg4[%c1, %c0_12] : memref<2x128xf32, #tpu.memory_space<vmem>>, vector<1x128xf32>
      %c0_13 = arith.constant 0 : index
      %c0_14 = arith.constant 0 : index
      %20 = vector.load %arg6[%c0_13, %c0_14] : memref<8x128xf32, #tpu.memory_space<vmem>>, vector<1x128xf32>
      %c1_15 = arith.constant 1 : index
      %c0_16 = arith.constant 0 : index
      %21 = vector.load %arg6[%c1_15, %c0_16] : memref<8x128xf32, #tpu.memory_space<vmem>>, vector<1x128xf32>
      %22 = math.log %20 : vector<1x128xf32>
      %23 = math.log %21 : vector<1x128xf32>
      %24 = arith.subf %22, %23 : vector<1x128xf32>
      %25 = arith.mulf %24, %19 : vector<1x128xf32>
      %26 = vector.shape_cast %25 : vector<1x128xf32> to vector<1x1x128xf32>
      %cst_17 = arith.constant dense<0.000000e+00> : vector<1xf32>
      %27 = vector.multi_reduction <add>, %26, %cst_17 [1, 2] : vector<1x1x128xf32> to vector<1xf32>
      %28 = vector.shape_cast %27 : vector<1xf32> to vector<1x1x1xf32>
      %29 = vector.extract %28[0, 0, 0] : f32 from vector<1x1x1xf32>
      %30 = vector.broadcast %29 : f32 to vector<8x128xf32>
      %c0_18 = arith.constant 0 : index
      %c0_19 = arith.constant 0 : index
      %31 = vector.load %arg5[%c0_18, %c0_19] : memref<8x128xf32, #tpu.memory_space<vmem>>, vector<8x128xf32>
      tpu.vector_store %arg5[%c0_18, %c0_19], %30 {strides = array<i32>} : memref<8x128xf32, #tpu.memory_space<vmem>>, vector<8x128xf32>,
    } else {
    }
    return
  }
  func.func @transform_0(%arg0: i32, %arg1: i32) -> (i32, i32) {
    %c0_i32 = arith.constant 0 : i32
    %c0_i32_0 = arith.constant 0 : i32
    return %c0_i32, %arg1 : i32, i32
  }
  func.func @transform_1(%arg0: i32, %arg1: i32) -> (i32, i32) {
    %c0_i32 = arith.constant 0 : i32
    %c0_i32_0 = arith.constant 0 : i32
    return %arg1, %c0_i32 : i32, i32
  }
  func.func @transform_2(%arg0: i32, %arg1: i32) -> (i32, i32) {
    %c0_i32 = arith.constant 0 : i32
    %c0_i32_0 = arith.constant 0 : i32
    return %c0_i32, %arg0 : i32, i32
  }
  func.func @transform_3(%arg0: i32, %arg1: i32) -> (i32, i32) {
    %c0_i32 = arith.constant 0 : i32
    %c0_i32_0 = arith.constant 0 : i32
    return %c0_i32, %arg0 : i32, i32
  }
}

</mosaic_0001>

<bundles_post_ra>
// kernel: tpu_custom_call.1
= control target key start
LH: loop header
LB: loop body
LE: loop exit
PB: predicated region body
PF: predicated region fallthrough
CT: control target
= control target key end

     0   :  { %v304_v3 = vmov 0   ;;  %s387_s0 = inlined_call_operand.vmem [shape: bf16[8,128], index: 0, kind: input, shape index: {}]   ;;  %s388_s1 = inlined_call_operand.vmem [shape: f32[128,1], index: 1, kind: input, shape index: {}]   ;;  %s389_s2 = inlined_call_operand.vmem [shape: f32[2,128], index: 2, kind: input, shape index: {}]   ;;  %s390_s3 = inlined_call_operand.hbm [shape: f32[8,128], index: 3, kind: output, shape index: {}]  }
   0x1   :  { %v34_v0 = vld [vmem:[%s388_s1 + $0x70] sm:$0xff]  ;;  %v32_v1 = vld [vmem:[%s388_s1 + $0x60] sm:$0xff]  ;;  %272 = vset.pattern.permute.xlu2 %v304_v3  ;;  %271 = vset.pattern.permute.xlu1 %v304_v3 }
   0x2   :  { %v30_v2 = vld [vmem:[%s388_s1 + $0x50] sm:$0xff]  ;;  %270 = vset.pattern.permute.xlu0 %v304_v3  ;;  %100 = vperm.xlu1 %271, %v32_v1  }
   0x3   :  { %110 = vperm.xlu0 %270, %v34_v0   ;;  %90 = vperm.xlu2 %272, %v30_v2  }
   0x4   :  { %8 = vsyncpa [#allocation4], 0  ;;  %v33_v4 = vld [vmem:[%s388_s1 + $0x68] sm:$0xff]  ;;  %v35_v5 = vld [vmem:[%s388_s1 + $0x78] sm:$0xff]  ;;  %v305_v24 = vmov 1.0|1.0  }
   0x5   :  { %v31_v6 = vld [vmem:[%s388_s1 + $0x58] sm:$0xff]  ;;  %v29_v7 = vld [vmem:[%s388_s1 + $0x48] sm:$0xff]  ;;  %v28_v8 = vld [vmem:[%s388_s1 + $0x40] sm:$0xff]  ;;  %s223_s25 = sshll.u32 %s390_s3, 4  ;;  %s224_s25 = int_to_ptr.hbm [resolvable:$true] %s223_s25 }
   0x6   :  { %v26_v9 = vld [vmem:[%s388_s1 + $0x30] sm:$0xff]  ;;  %v24_v10 = vld [vmem:[%s388_s1 + $0x20] sm:$0xff]  ;;  %v27_v11 = vld [vmem:[%s388_s1 + $0x38] sm:$0xff] }
   0x7   :  { %v25_v12 = vld [vmem:[%s388_s1 + $0x28] sm:$0xff]  ;;  %v23_v13 = vld [vmem:[%s388_s1 + $0x18] sm:$0xff]  ;;  %v22_v14 = vld [vmem:[%s388_s1 + $0x10] sm:$0xff] }
   0x8   :  { %v20_v15 = vld [vmem:[%s388_s1] sm:$0xff]  ;;  %v21_v16 = vld [vmem:[%s388_s1 + $0x8] sm:$0xff] }
   0x9   :  { %v273_v20 = vld [vmem:[%s389_s2] ss:$0 sm:$0xff]  ;;  %v194_v44 = vld [vmem:[%s389_s2 + $0x1] sm:$0x1] }
   0xa   :  { %105 = vperm.xlu1 %271, %v33_v4   ;;  %v175_v35 = vld [vmem:[%s387_s0] sm:$0xf]  ;;  %s306_s0 = smov [#allocation3]  }
   0xb   :  { %115 = vperm.xlu0 %270, %v35_v5   ;;  %95 = vperm.xlu2 %272, %v31_v6   ;;  %s221_s22 = sshll.u32 %s306_s0, 4  ;;  %s222_s22 = int_to_ptr.vmem [resolvable:$true] %s221_s22 }
  0x12   :  { %85 = vperm.xlu1 %271, %v29_v7  }
  0x13   :  { %80 = vperm.xlu0 %270, %v28_v8   ;;  %70 = vperm.xlu2 %272, %v26_v9  }
  0x1a   :  { %60 = vperm.xlu1 %271, %v24_v10  }
  0x1b   :  { %75 = vperm.xlu0 %270, %v27_v11   ;;  %65 = vperm.xlu2 %272, %v25_v12  }
  0x22   :  { %55 = vperm.xlu1 %271, %v23_v13  }
  0x23   :  { %50 = vperm.xlu0 %270, %v22_v14   ;;  %40 = vperm.xlu2 %272, %v20_v15  }
  0x2b   :  { %45 = vperm.xlu0 %270, %v21_v16  }
  0x5d   :  { %v91_v17 = vpop.permute.xlu2 %90 }
  0x5e   :  { %vm128_vm6 = vcmp.le.f32.partialorder %v273_v20, %v91_v17 }
  0x65   :  { %v96_v22 = vpop.permute.xlu2 %95 }
  0x66   :  { %vm129_vm7 = vcmp.le.f32.partialorder %v273_v20, %v96_v22 }
  0x67   :  { %vm252_vm8 = vmpackc.low %vm129_vm7, %vm128_vm6 }
  0x6d   :  { %v71_v27 = vpop.permute.xlu2 %70 }
  0x6e   :  { %vm124_vm12 = vcmp.le.f32.partialorder %v273_v20, %v71_v27 }
  0x74   :  { %v101_v18 = vpop.permute.xlu1 %100 }
  0x75   :  { %v111_v19 = vpop.permute.xlu0 %110  ;;  %vm130_vm4 = vcmp.le.f32.partialorder %v273_v20, %v101_v18  ;;  %v66_v30 = vpop.permute.xlu2 %65 }
  0x76   :  { %vm132_vm0 = vcmp.le.f32.partialorder %v273_v20, %v111_v19 }
  0x7c   :  { %v106_v21 = vpop.permute.xlu1 %105 }
  0x7d   :  { %v116_v23 = vpop.permute.xlu0 %115  ;;  %vm131_vm3 = vcmp.le.f32.partialorder %v273_v20, %v106_v21  ;;  %v41_v33 = vpop.permute.xlu2 %40 }
  0x7e   :  { %vm133_vm1 = vcmp.le.f32.partialorder %v273_v20, %v116_v23  ;;  %vm250_vm5 = vmpackc.low %vm131_vm3, %vm130_vm4 }
  0x7f   :  { %vm248_vm2 = vmpackc.low %vm133_vm1, %vm132_vm0  ;;  %vm123_vm0 = vcmp.le.f32.partialorder %v273_v20, %v66_v30 }
  0x80   :  { %249 = vmatpush.bf16.msk.msra.mxu0 %vm248_vm2, %v305_v24 }
  0x84   :  { %251 = vmatpush.bf16.msk.msra.mxu0 %vm250_vm5, %v305_v24  ;;  %v86_v25 = vpop.permute.xlu1 %85  ;;  %vm118_vm5 = vcmp.le.f32.partialorder %v273_v20, %v41_v33 }
  0x85   :  { %v81_v26 = vpop.permute.xlu0 %80  ;;  %vm127_vm9 = vcmp.le.f32.partialorder %v273_v20, %v86_v25 }
  0x86   :  { %vm126_vm10 = vcmp.le.f32.partialorder %v273_v20, %v81_v26 }
  0x87   :  { %vm254_vm11 = vmpackc.low %vm127_vm9, %vm126_vm10 }
  0x88   :  { %253 = vmatpush.bf16.msk.msra.mxu0 %vm252_vm8, %v305_v24  ;;  %vm203_vm8 = vcmask 1040384  }
  0x8c   :  { %255 = vmatpush.bf16.msk.msra.mxu0 %vm254_vm11, %v305_v24  ;;  %v61_v28 = vpop.permute.xlu1 %60 }
  0x8d   :  { %v76_v29 = vpop.permute.xlu0 %75  ;;  %vm122_vm15 = vcmp.le.f32.partialorder %v273_v20, %v61_v28 }
  0x8e   :  { %vm125_vm13 = vcmp.le.f32.partialorder %v273_v20, %v76_v29  ;;  %vm258_vm1 = vmpackc.low %vm123_vm0, %vm122_vm15 }
  0x8f   :  { %vm256_vm14 = vmpackc.low %vm125_vm13, %vm124_vm12 }
  0x90   :  { %257 = vmatpush.bf16.msk.msra.mxu0 %vm256_vm14, %v305_v24 }
  0x94   :  { %259 = vmatpush.bf16.msk.msra.mxu0 %vm258_vm1, %v305_v24  ;;  %v56_v31 = vpop.permute.xlu1 %55 }
  0x95   :  { %vm121_vm2 = vcmp.le.f32.partialorder %v273_v20, %v56_v31  ;;  %v51_v32 = vpop.permute.xlu0 %50 }
  0x96   :  { %vm120_vm3 = vcmp.le.f32.partialorder %v273_v20, %v51_v32 }
  0x97   :  { %vm260_vm4 = vmpackc.low %vm121_vm2, %vm120_vm3 }
  0x98   :  { %261 = vmatpush.bf16.msk.msra.mxu0 %vm260_vm4, %v305_v24 }
  0x9d   :  { %v46_v34 = vpop.permute.xlu0 %45 }
  0x9e   :  { %vm119_vm6 = vcmp.le.f32.partialorder %v273_v20, %v46_v34 }
  0x9f   :  { %vm262_vm7 = vmpackc.low %vm119_vm6, %vm118_vm5 }
  0xa0   :  { %263 = vmatpush.bf16.msk.msra.mxu0 %vm262_vm7, %v305_v24 }
  0xa3   :  { %184 = vmatmul.bf16.vlgmr.msra.gmra.mxu0 %v175_v35 }
 0x120   :  { %v185_v36 = vpop.f32.mrf.mxu0 }
 0x121   :  { %190 = vst [vmem:[#allocation2] sm:$0xff] %v185_v36 }
 0x128   :  { %v187_v37 = vpop.f32.mrf.mxu0  ;;  %v195_v38 = vld [vmem:[#allocation2] sm:$0x1]  ;;  %v196_v39 = vld [vmem:[#allocation2 + $0x1] sm:$0x1] }
 0x129   :  { %274 = vlog2.f32 %v195_v38 }
 0x12a   :  { %276 = vlog2.f32 %v196_v39 }
 0x12f   :  { %v275_v40 = vpop.eup %274 }
 0x130   :  { %v277_v41 = vpop.eup %276  ;;  %v198_v42 = vmul.f32 0.6931472, %v275_v40 }
 0x131   :  { %v200_v43 = vmul.f32 0.6931472, %v277_v41 }
 0x133   :  { %v201_v45 = vsub.f32 %v198_v42, %v200_v43 }
 0x135   :  { %v202_v46 = vmul.f32 %v201_v45, %v194_v44 }
 0x137   :  { %v204_v47 = vsel %vm203_vm8, %v202_v46, 0.0 }
 0x138   :  { %205 = vadd.xlane.f32.xlu1 %v204_v47 }
 0x1ab   :  { %v206_v48 = vpop.xlane.xlu1 %205 }
 0x1ac   :  { %v207_v49 = vrot.slane %v206_v48, 4 }
 0x1ae   :  { %v208_v50 = vadd.f32 %v207_v49, %v206_v48 }
 0x1b0   :  { %v209_v51 = vrot.slane %v208_v50, 2 }
 0x1b2   :  { %v210_v52 = vadd.f32 %v209_v51, %v208_v50 }
 0x1b4   :  { %v211_v53 = vrot.slane %v210_v52, 1 }
 0x1b6   :  { %v212_v54 = vadd.f32 %v211_v53, %v210_v52 }
 0x1b8   :  { %264 = vpush %v212_v54 }
 0x1e9   :  { %s265_s2 = spop %264 }
 0x1ea   :  { %v214_v55 = vstv %s265_s2 }
 0x1eb   :  { %215 = vst [vmem:[#allocation3] sm:$0xff] %v214_v55 }
 0x1ec   :  { %226 = dma.vmem_to_hbm [thread:$0]  %s222_s22, 128, %s224_s25, [#allocation4]  }
 0x1ed   :  { %302 = dma.done.wait [#allocation4], 128  }
 0x1ee   :  { %303 = vsyncadd [#allocation4], 4294967168 }
 0x1ef   :  { %231 = vsyncpa [#allocation4], 1 }

</bundles_post_ra>
